<compile_context>
chip_gen: v7x
topology: tpu7x:2x2x1
jax: 0.10.0
libtpu: 0.0.40
codegen_flags: <defaults>
</compile_context>

<pallas_src>
import jax
import jax.numpy as jnp
from jax.experimental import pallas as pl
from jax.experimental.pallas import tpu as pltpu


_SUB = 8  # sublane granularity for the 32-bit x / output tiles


def _round_up(x, m):
    return (x + m - 1) // m * m


# ----------------------------------------------------------------------------
# Kernels
# ----------------------------------------------------------------------------
def _domain_predictor_kernel_c1(a_ref, x_ref, w1_ref, b1_ref, w2_ref, b2_ref, o_ref):
    # a_ref : SMEM (1,) f32 — PReLU slope (num_parameters=1)
    # x_ref : (bm, F) f32 (cast to bf16 here, under the input DMA)
    # w1_ref: (F, E) bf16   b1_ref: (1, E) f32
    # w2_ref: (1, E) f32    b2_ref: (1, 1) f32   o_ref: (bm, 1) f32
    emb = jnp.dot(x_ref[...].astype(w1_ref.dtype), w1_ref[...],
                  preferred_element_type=jnp.float32)
    emb = emb + b1_ref[...]

    # PReLU with a single shared parameter (f32 on the VPU).
    alpha = a_ref[0]
    emb = jnp.where(emb >= 0, emb, alpha * emb)

    # TODO(synk): Dropout(p=0.1) is stochastic (fresh nn.Dropout every forward);
    # reproduced deterministically as identity (eval semantics).

    # domain_classifier for n_centers == 1: VPU multiply + XLU lane reduction,
    # directly producing the unpadded (bm, 1) output (no padded MXU matmul).
    o_ref[...] = ((emb * w2_ref[...]).sum(axis=-1, keepdims=True)
                  + b2_ref[...]).astype(o_ref.dtype)


def _domain_predictor_kernel_mxu(a_ref, x_ref, w1_ref, b1_ref, w2_ref, b2_ref, o_ref):
    # Fallback for n_centers > 1: second layer on the MXU, bf16 x bf16, f32 acc.
    # w2_ref: (E, C) bf16   b2_ref: (1, C) f32   o_ref: (bm, C) f32
    emb = jnp.dot(x_ref[...].astype(w1_ref.dtype), w1_ref[...],
                  preferred_element_type=jnp.float32)
    emb = emb + b1_ref[...]
    alpha = a_ref[0]
    emb = jnp.where(emb >= 0, emb, alpha * emb)
    # TODO(synk): Dropout(p=0.1) reproduced as identity (eval semantics).
    o_ref[...] = (jnp.dot(emb.astype(w2_ref.dtype), w2_ref[...],
                          preferred_element_type=jnp.float32)
                  + b2_ref[...]).astype(o_ref.dtype)


# ----------------------------------------------------------------------------
# One-time parameter preparation (cast / layout done once, not per forward)
# ----------------------------------------------------------------------------
def prepare_domain_predictor_params(w1, b1, w2, b2, prelu_a, mxu_dtype=jnp.bfloat16):
    """w1: (E, F) nn.Linear weight. b1: (E,). w2: (C, E). b2: (C,). prelu_a: ()."""
    E, F = w1.shape
    C = w2.shape[0]
    params = {
        "F": F, "E": E, "C": C,
        "w1_t": jnp.asarray(w1, jnp.float32).T.astype(mxu_dtype),      # (F, E) bf16
        "b1": jnp.asarray(b1, jnp.float32).reshape(1, E),
        "b2": jnp.asarray(b2, jnp.float32).reshape(1, C),
        "alpha": jnp.asarray(prelu_a, jnp.float32).reshape(1),
    }
    if C == 1:
        params["w2"] = jnp.asarray(w2, jnp.float32).reshape(1, E)       # (1, E) f32 row
    else:
        params["w2"] = jnp.asarray(w2, jnp.float32).T.astype(mxu_dtype)  # (E, C) bf16
    return params


# ----------------------------------------------------------------------------
# Forward wrapper
# ----------------------------------------------------------------------------
def domain_predictor_forward(x, params, *, bm=512):
    """x: (B, F) float32. Returns (B, n_centers) float32."""
    B, F = x.shape
    E, C = params["E"], params["C"]
    assert F == params["F"]

    # Batch tile: as large as requested, sublane multiple, never larger than the
    # (rounded-up) batch; keep >= 2 grid steps when there is enough work so the
    # parallel axis can shard across both v7x TensorCores.
    bm = max(_SUB, min(_round_up(bm, _SUB), _round_up(B, _SUB)))
    if pl.cdiv(B, bm) < 2 and B > _SUB:
        bm = _round_up(pl.cdiv(B, 2), _SUB)
    grid = (pl.cdiv(B, bm),)

    w_itemsize = jnp.dtype(params["w1_t"].dtype).itemsize
    c_lanes = max(C, 128)  # VMEM lane padding for narrow outputs / biases

    if C == 1:
        kernel = _domain_predictor_kernel_c1
        w2_block = (1, E)
        w2_vmem = 2 * _SUB * E * 4
        w2_hbm = E * 4
    else:
        kernel = _domain_predictor_kernel_mxu
        w2_block = (E, C)
        w2_vmem = 2 * E * c_lanes * jnp.dtype(params["w2"].dtype).itemsize
        w2_hbm = E * C * jnp.dtype(params["w2"].dtype).itemsize

    # VMEM budget: count 2x buffering for *every* block (constant index_maps do
    # not shrink the allocation), with 2x headroom, capped under the v7x scoped
    # default so it is safe on all generations.
    vmem_bytes = (
        2 * bm * F * 4            # x tiles (f32, double-buffered)
        + 2 * bm * c_lanes * 4    # out tiles (lane-padded in VMEM)
        + 2 * F * E * w_itemsize  # W1 (bf16)
        + 2 * _SUB * E * 4        # b1 (sublane-padded)
        + w2_vmem                 # W2 / w2 row
        + 2 * _SUB * c_lanes * 4  # b2
    )
    vmem_limit = int(min(max(2 * vmem_bytes, 4 << 20), 32 << 20))

    cost = pl.CostEstimate(
        flops=2 * B * F * E + 2 * B * E * C,
        transcendentals=0,
        bytes_accessed=(B * F * 4 + F * E * w_itemsize + E * 4
                        + w2_hbm + C * 4 + B * C * 4),
    )

    out = pl.pallas_call(
        kernel,
        out_shape=jax.ShapeDtypeStruct((B, C), jnp.float32),
        grid_spec=pltpu.PrefetchScalarGridSpec(
            num_scalar_prefetch=0,
            grid=grid,
            in_specs=[
                pl.BlockSpec(memory_space=pltpu.SMEM),           # prelu alpha (scalar)
                pl.BlockSpec((bm, F), lambda i: (i, 0)),         # x tile (f32, streamed)
                pl.BlockSpec((F, E), lambda i: (0, 0)),          # W1^T (bf16, resident)
                pl.BlockSpec((1, E), lambda i: (0, 0)),          # b1 (resident)
                pl.BlockSpec(w2_block, lambda i: (0, 0)),        # W2 (resident)
                pl.BlockSpec((1, C), lambda i: (0, 0)),          # b2 (resident)
            ],
            out_specs=pl.BlockSpec((bm, C), lambda i: (i, 0)),   # unpadded output
        ),
        compiler_params=pltpu.CompilerParams(
            dimension_semantics=("parallel",),
            vmem_limit_bytes=vmem_limit),
        cost_estimate=cost,
    )(params["alpha"], x, params["w1_t"], params["b1"], params["w2"], params["b2"])

    return out


# ----------------------------------------------------------------------------
# References
# ----------------------------------------------------------------------------
def reference_forward_matched(x, w1, b1, w2, b2, prelu_a, mxu_dtype=jnp.bfloat16):
    # Same precision recipe as the kernel: bf16 MXU layer 1, f32 accumulation,
    # f32 PReLU / biases; layer 2 in f32 (C==1 VPU path) or bf16 MXU otherwise.
    emb = jnp.dot(x.astype(mxu_dtype), w1.T.astype(mxu_dtype),
                  preferred_element_type=jnp.float32) + b1.reshape(1, -1)
    emb = jnp.where(emb >= 0, emb, prelu_a * emb)
    C = w2.shape[0]
    if C == 1:
        return (emb * w2.reshape(1, -1)).sum(-1, keepdims=True) + b2.reshape(1, -1)
    return jnp.dot(emb.astype(mxu_dtype), w2.T.astype(mxu_dtype),
                   preferred_element_type=jnp.float32) + b2.reshape(1, -1)


def reference_forward_f32(x, w1, b1, w2, b2, prelu_a):
    emb = x @ w1.T + b1.reshape(1, -1)
    emb = jnp.where(emb >= 0, emb, prelu_a * emb)
    return emb @ w2.T + b2.reshape(1, -1)


# ----------------------------------------------------------------------------
if __name__ == "__main__":
    # Shapes consistent with the module (resnet18-ish): fc_input_features=256,
    # E=128, n_centers=1; batch chosen so the kernel runs >= 2 grid steps.
    B, F, E, C = 64, 256, 128, 1

    key = jax.random.PRNGKey(0)
    kx, k1, k2, k3, k4 = jax.random.split(key, 5)

    x = jax.random.normal(kx, (B, F), dtype=jnp.float32)

    # nn.Linear layout: weight (out, in), bias (out,).
    w1 = jax.random.normal(k1, (E, F), dtype=jnp.float32) * 0.02
    b1 = jax.random.normal(k2, (E,), dtype=jnp.float32) * 0.02
    w2 = jax.random.normal(k3, (C, E), dtype=jnp.float32) * 0.02
    b2 = jax.random.normal(k4, (C,), dtype=jnp.float32) * 0.02
    prelu_a = jnp.float32(0.25)   # PReLU(num_parameters=1, init=0.25)

    params = prepare_domain_predictor_params(w1, b1, w2, b2, prelu_a)

    out = domain_predictor_forward(x, params)
    out = jax.block_until_ready(out)
    assert out.shape == (B, C)

    # Exact-semantics check (same bf16-MXU / f32-accumulate recipe).
    ref_matched = reference_forward_matched(x, w1, b1, w2, b2, prelu_a)
    assert jnp.allclose(out, ref_matched, atol=5e-4, rtol=1e-3), "mismatch vs matched ref"

    # Loose check vs full-f32 PyTorch-equivalent math (bf16 MXU precision trade).
    ref_f32 = reference_forward_f32(x, w1, b1, w2, b2, prelu_a)
    assert jnp.allclose(out, ref_f32, atol=2e-2, rtol=2e-2), "mismatch vs f32 ref"

    # Ragged batch: B not a multiple of the tile -> partial final grid block,
    # no wrapper-side padding (padded rows are never stored / never read back).
    out_r = jax.block_until_ready(domain_predictor_forward(x[:37], params))
    assert out_r.shape == (37, C)
    assert jnp.allclose(out_r, ref_matched[:37], atol=5e-4, rtol=1e-3), "ragged mismatch"

    print("KERNEL_OK")
</pallas_src>

<mosaic_0001>
module attributes {stable_mosaic.version = 11 : i64} {
  func.func @_domain_predictor_kernel_c1(%arg0: i32, %arg1: memref<1xf32, #tpu.memory_space<smem>>, %arg2: memref<32x256xf32, #tpu.memory_space<vmem>>, %arg3: memref<256x128xbf16, #tpu.memory_space<vmem>>, %arg4: memref<1x128xf32, #tpu.memory_space<vmem>>, %arg5: memref<1x128xf32, #tpu.memory_space<vmem>>, %arg6: memref<1x1xf32, #tpu.memory_space<vmem>>, %arg7: memref<32x1xf32, #tpu.memory_space<vmem>>) attributes {dimension_semantics = [#tpu.dimension_semantics<parallel>], iteration_bounds = array<i64: 2>, scalar_prefetch = 0 : i64, scratch_operands = 0 : i64, tpu.core_type = #tpu.core_type<tc>, window_params = [{transform_indices = @transform_0, window_bounds = array<i64: 1>}, {transform_indices = @transform_1, window_bounds = array<i64: 32, 256>}, {pipeline_mode = #tpu.pipeline_mode<synchronous>, transform_indices = @transform_2, window_bounds = array<i64: 256, 128>}, {pipeline_mode = #tpu.pipeline_mode<synchronous>, transform_indices = @transform_3, window_bounds = array<i64: 1, 128>}, {pipeline_mode = #tpu.pipeline_mode<synchronous>, transform_indices = @transform_4, window_bounds = array<i64: 1, 128>}, {pipeline_mode = #tpu.pipeline_mode<synchronous>, transform_indices = @transform_5, window_bounds = array<i64: 1, 1>}, {transform_indices = @transform_6, window_bounds = array<i64: 32, 1>}]} {
    %c0 = arith.constant 0 : index
    %c0_0 = arith.constant 0 : index
    %0 = vector.load %arg2[%c0, %c0_0] : memref<32x256xf32, #tpu.memory_space<vmem>>, vector<32x256xf32>
    %1 = arith.truncf %0 : vector<32x256xf32> to vector<32x256xbf16>
    %c0_1 = arith.constant 0 : index
    %c0_2 = arith.constant 0 : index
    %2 = vector.load %arg3[%c0_1, %c0_2] : memref<256x128xbf16, #tpu.memory_space<vmem>>, vector<256x128xbf16>
    %cst = arith.constant dense<0.000000e+00> : vector<32x128xf32>
    %3 = tpu.matmul %1, %2, %cst {dimension_numbers = #tpu.dot_dimension_numbers<[1], [0], [0], [1], [0, 0, 1, 1], [], []>} : vector<32x256xbf16>, vector<256x128xbf16>, vector<32x128xf32> -> vector<32x128xf32>
    %c0_3 = arith.constant 0 : index
    %c0_4 = arith.constant 0 : index
    %4 = vector.load %arg4[%c0_3, %c0_4] : memref<1x128xf32, #tpu.memory_space<vmem>>, vector<1x128xf32>
    %5 = vector.broadcast %4 : vector<1x128xf32> to vector<32x128xf32>
    %6 = arith.addf %3, %5 : vector<32x128xf32>
    %c0_5 = arith.constant 0 : index
    %7 = memref.load %arg1[%c0_5] : memref<1xf32, #tpu.memory_space<smem>>
    %cst_6 = arith.constant 0.000000e+00 : f32
    %8 = vector.broadcast %cst_6 : f32 to vector<32x128xf32>
    %9 = arith.cmpf oge, %6, %8 : vector<32x128xf32>
    %10 = vector.broadcast %7 : f32 to vector<32x128xf32>
    %11 = arith.mulf %10, %6 : vector<32x128xf32>
    %12 = arith.select %9, %6, %11 : vector<32x128xi1>, vector<32x128xf32>
    %c0_7 = arith.constant 0 : index
    %c0_8 = arith.constant 0 : index
    %13 = vector.load %arg5[%c0_7, %c0_8] : memref<1x128xf32, #tpu.memory_space<vmem>>, vector<1x128xf32>
    %14 = vector.broadcast %13 : vector<1x128xf32> to vector<32x128xf32>
    %15 = arith.mulf %12, %14 : vector<32x128xf32>
    %cst_9 = arith.constant dense<0.000000e+00> : vector<32xf32>
    %16 = vector.multi_reduction <add>, %15, %cst_9 [1] : vector<32x128xf32> to vector<32xf32>
    %17 = vector.shape_cast %16 : vector<32xf32> to vector<32x1xf32>
    %c0_10 = arith.constant 0 : index
    %c0_11 = arith.constant 0 : index
    %18 = vector.load %arg6[%c0_10, %c0_11] : memref<1x1xf32, #tpu.memory_space<vmem>>, vector<1x1xf32>
    %19 = vector.broadcast %18 : vector<1x1xf32> to vector<32x1xf32>
    %20 = arith.addf %17, %19 : vector<32x1xf32>
    %c0_12 = arith.constant 0 : index
    %c0_13 = arith.constant 0 : index
    %21 = vector.load %arg7[%c0_12, %c0_13] : memref<32x1xf32, #tpu.memory_space<vmem>>, vector<32x1xf32>
    tpu.vector_store %arg7[%c0_12, %c0_13], %20 {strides = array<i32>} : memref<32x1xf32, #tpu.memory_space<vmem>>, vector<32x1xf32>,
    return
  }
  func.func @transform_0(%arg0: i32) -> i32 {
    %c0_i32 = arith.constant 0 : i32
    %c0_i32_0 = arith.constant 0 : i32
    return %c0_i32 : i32
  }
  func.func @transform_1(%arg0: i32) -> (i32, i32) {
    %c0_i32 = arith.constant 0 : i32
    %c0_i32_0 = arith.constant 0 : i32
    return %arg0, %c0_i32 : i32, i32
  }
  func.func @transform_2(%arg0: i32) -> (i32, i32) {
    %c0_i32 = arith.constant 0 : i32
    %c0_i32_0 = arith.constant 0 : i32
    %c0_i32_1 = arith.constant 0 : i32
    return %c0_i32, %c0_i32_0 : i32, i32
  }
  func.func @transform_3(%arg0: i32) -> (i32, i32) {
    %c0_i32 = arith.constant 0 : i32
    %c0_i32_0 = arith.constant 0 : i32
    %c0_i32_1 = arith.constant 0 : i32
    return %c0_i32, %c0_i32_0 : i32, i32
  }
  func.func @transform_4(%arg0: i32) -> (i32, i32) {
    %c0_i32 = arith.constant 0 : i32
    %c0_i32_0 = arith.constant 0 : i32
    %c0_i32_1 = arith.constant 0 : i32
    return %c0_i32, %c0_i32_0 : i32, i32
  }
  func.func @transform_5(%arg0: i32) -> (i32, i32) {
    %c0_i32 = arith.constant 0 : i32
    %c0_i32_0 = arith.constant 0 : i32
    %c0_i32_1 = arith.constant 0 : i32
    return %c0_i32, %c0_i32_0 : i32, i32
  }
  func.func @transform_6(%arg0: i32) -> (i32, i32) {
    %c0_i32 = arith.constant 0 : i32
    %c0_i32_0 = arith.constant 0 : i32
    return %arg0, %c0_i32 : i32, i32
  }
}

</mosaic_0001>

<bundles_post_ra>
// kernel: tpu_custom_call.1
= control target key start
LH: loop header
LB: loop body
LE: loop exit
PB: predicated region body
PF: predicated region fallthrough
CT: control target
= control target key end

     0   :  { %s1073_s0 = inlined_call_operand.<no memory space> [shape: f32[1], index: 0, kind: input, shape index: {}]   ;;  %s1074_s1 = inlined_call_operand.hbm [shape: f32[64,256], index: 1, kind: input, shape index: {}]   ;;  %s1075_s2 = inlined_call_operand.hbm [shape: bf16[256,128], index: 2, kind: input, shape index: {}]   ;;  %s1076_s3 = inlined_call_operand.vmem [shape: f32[1,128], index: 3, kind: input, shape index: {}]   ;;  %s1077_s4 = inlined_call_operand.vmem [shape: f32[1,128], index: 4, kind: input, shape index: {}]   ;;  %s1078_s5 = inlined_call_operand.<no memory space> [shape: f32[1,1], index: 5, kind: input, shape index: {}]   ;;  %s1079_s6 = inlined_call_operand.vmem [shape: f32[64,1], index: 6, kind: output, shape index: {}]  }
   0x1   :  { %11 = sst [smem:[#allocation2]] %s1073_s0  ;;  %v12_v0 = vstv %s1078_s5 }
   0x2   :  { %13 = vst [vmem:[#allocation3] sm:$0x1] %v12_v0 }
   0x3   :  { %14 = vsyncpa [#allocation5], 0 }
   0x4   :  { %16 = vsyncpa [#allocation5 + $0x1], 0 }
   0x5   :  { %17 = vsyncpa [#allocation7], 0  ;;  %s912_s25 = smov 0   ;;  %s914_s26 = smov 0  }
   0x6   :  { %s916_s27 = smov 0   ;;  %s918_s28 = smov 0  }
   0x7 LB: > { %s616_s0 = sadd.s32 4294967295, %s863_s28   ;;  %p64_p0 = scmp.ne.s32.totalorder %s855_s26, %s851_s25  ;;  %s863_s28 = sphi %s918_s28, %s1096_s28   ;;  %s859_s27 = sphi %s916_s27, %s1095_s27   ;;  %s855_s26 = sphi %s914_s26, %s1094_s26   ;;  %s851_s25 = sphi %s912_s25, %s1093_s25  }
   0x8   : > { %p934_p1 = scmp.eq.s32.totalorder %s616_s0, 0  ;;  %p618_p2 = scmp.ge.s32.totalorder %s863_s28, 1 }
   0x9   : > { %p185_p3 = scmp.lt.s32.totalorder %s863_s28, 3  ;;  %s865_s7 = smov [#allocation6]  }
   0xa   : > { %s1084_s5 = scalar_select %p934_p1, 1, 0 }
   0xb   : > { %p942_p4 = por %p934_p1, %p64_p0  ;;  %p946_p5 = pnand %p618_p2, %p185_p3 }
   0xc   : > { %s200_s8 = sshll.u32 %s865_s7, 4  ;;  %s959_s10 = sadd.s32 1, %s863_s28   ;;  %s201_s8 = int_to_ptr.vmem [resolvable:$true] %s200_s8 }
   0xd   : > { %s1085_s29 = scalar_select %p942_p4, 1, 0 }
   0xe   : > { %s1086_s30 = scalar_select %p946_p5, 1, 0 }
   0xf   : > { %p703_p6 = pneg %p946_p5  ;;  %s51_s11 = sadd.s32 1, %s859_s27 }
  0x10   : > { %s48_s12 = ssub.s32 %s863_s28, %s959_s10  ;;  %s767_s15 = scalar_lea.hbm %s1075_s2, 2048 }
  0x11   : > { %p954_p7 = pnand %p703_p6, %p934_p1  ;;  %p768_p8 = scmp.ne.s32.totalorder %s1075_s2, %s767_s15 }
  0x12   : > { %p774_p12 = scmp.lt.u32.totalorder %s767_s15, %s1075_s2 }
  0x13   : > { %p769_p9 = pneg %p954_p7 }
  0x15   : > { %p770_p10 = pnand %p769_p9, %p768_p8 }
  0x17   : > { %p771_p11 = pneg %p770_p10 }
  0x19   : > { %p776_p13 = pnand %p774_p12, %p771_p11 }
  0x1b   : > { %779 = shalt.err (!%p776_p13)
}
  0x1c   : > { %s780_s20 = scalar_lea.vmem %s201_s8, 2048  ;;  %p788_p6 = scmp.lt.s32.totalorder %s201_s8, %s201_s8 }
  0x1d   : > { %p781_p0 = scmp.ne.s32.totalorder %s201_s8, %s780_s20  ;;  %p789_p1 = scmp.lt.s32.totalorder %s780_s20, %s780_s20 }
  0x1f   : > { %p783_p2 = pnand %p781_p0, %p769_p9  ;;  %p790_p4 = por %p789_p1, %p788_p6 }
  0x21   : > { %p784_p3 = pneg %p783_p2 }
  0x23   : > { %p791_p5 = pnand %p790_p4, %p784_p3 }
  0x25   : > { %794 = shalt.err (!%p791_p5)
}
  0x26   : > { %s866_s21 = smov 64   ;;  %s867_s22 = smov 4  }
  0x27   : > { %706 = dma.hbm_to_vmem [thread:$0]  (!%p954_p7), %s1075_s2, 2048, %s201_s8, [#allocation7], %s866_s21, %s866_s21, %s867_s22  }
  0x28   : > { %p49_p8 = scmp.eq.s32.totalorder %s48_s12, 0  ;;  %p58_p9 = scmp.ne.s32.totalorder %s859_s27, %s855_s26 }
  0x29   : > { %p59_p1 = scmp.eq.s32.totalorder %s863_s28, 0  ;;  %p712_p4 = scmp.lt.s32.totalorder %s863_s28, 2 }
  0x2a   : > { %s985_s25 = scalar_select %p49_p8, %s859_s27, %s51_s11  }
  0x2b   : > { %p60_p5 = por %p59_p1, %p58_p9  ;;  %s223_s7 = sand.u32 1, %s859_s27  }
  0x2c   : > { %s621_s13 = sshll.u32 %s223_s7, 6  ;;  %s652_s14 = sshll.u32 %s863_s28, 10 }
  0x2d   : > { %s992_s17 = scalar_lea.hbm %s1074_s1, %s652_s14  ;;  %s227_s8 = scalar_lea.vmem [#allocation4], %s621_s13 }
  0x2e   : > { %s235_s9 = sshll.u32 %s227_s8, 4  ;;  %p996_p7 = pnand %p712_p4, %p60_p5  ;;  %s994_s9 = int_to_ptr.vmem [resolvable:$true] %s235_s9 }
  0x2f   : > { %s1000_s12 = scalar_lea.sflag [#allocation5], %s223_s7  ;;  %s795_s18 = scalar_lea.hbm %s992_s17, 1024 }
  0x30   : > { %p796_p10 = scmp.ne.s32.totalorder %s992_s17, %s795_s18  ;;  %p797_p11 = pneg %p996_p7 }
  0x31   : > { %s800_s21 = scalar_lea.hbm %s1074_s1, 2048  ;;  %p801_p0 = scmp.lt.u32.totalorder %s992_s17, %s1074_s1 }
  0x32   : > { %p798_p12 = pnand %p797_p11, %p796_p10  ;;  %p802_p2 = scmp.lt.u32.totalorder %s800_s21, %s795_s18 }
  0x33   : > { %p804_p6 = scmp.lt.u32.totalorder %s795_s18, %s992_s17 }
  0x34   : > { %p799_p13 = pneg %p798_p12  ;;  %p803_p3 = por %p802_p2, %p801_p0 }
  0x36   : > { %p805_p8 = por %p804_p6, %p803_p3 }
  0x38   : > { %p806_p9 = pnand %p805_p8, %p799_p13 }
  0x3a   : > { %809 = shalt.err (!%p806_p9)
}
  0x3b   : > { %s810_s24 = scalar_lea.vmem %s994_s9, 1024  ;;  %s868_s7 = smov [#allocation4]  }
  0x3c   : > { %p811_p1 = scmp.ne.s32.totalorder %s994_s9, %s810_s24  ;;  %s815_s13 = sshll.u32 %s868_s7, 4  ;;  %s816_s13 = int_to_ptr.vmem [resolvable:$false] %s815_s13 }
  0x3d   : > { %s817_s14 = scalar_lea.vmem %s816_s13, 2048  ;;  %p818_p10 = scmp.lt.s32.totalorder %s994_s9, %s816_s13 }
  0x3e   : > { %p813_p4 = pnand %p811_p1, %p797_p11  ;;  %p819_p12 = scmp.lt.s32.totalorder %s817_s14, %s810_s24 }
  0x40   : > { %p814_p5 = pneg %p813_p4  ;;  %p820_p0 = por %p819_p12, %p818_p10 }
  0x42   : > { %p821_p2 = pnand %p820_p0, %p814_p5 }
  0x44   : > { %824 = shalt.err (!%p821_p2)
}
  0x45   : > { %s869_s15 = smov 256   ;;  %s870_s16 = smov 16  }
  0x46   : > { %710 = dma.hbm_to_vmem [thread:$0]  (!%p996_p7), %s992_s17, 1024, %s994_s9, %s1000_s12, %s869_s15, %s869_s15, %s870_s16  }
  0x47   : > { %p1089_p11 = scmp.ne.s32.totalorder %s1086_s30, 0 }
  0x48   : > { %s249_s8 = sand.u32 (!%p1089_p11), 1, %s855_s26   ;;  %p1090_p13 = scmp.ne.s32.totalorder (!%p1089_p11), %s1085_s29, 0 }
  0x49   : > { %247 = sbr.rel (%p1089_p11) target bundleno = 489 (0x1e9), region = 44  ;;  %s626_s18 = sshll.u32 (!%p1089_p11), %s249_s8, 6 }
  0x4a   : > { %s250_s19 = scalar_lea.sflag (!%p1089_p11), [#allocation5], %s249_s8  ;;  %s1031_s20 = scalar_lea.vmem (!%p1089_p11), [#allocation4], %s626_s18 }
  0x50   : > { %842 = dma.done.wait (%p1090_p13), %s250_s19, 1024  }
  0x51   : > { %844 = vsyncadd (%p1090_p13), %s250_s19, 4294966272  ;;  %p1091_p3 = scmp.ne.s32.totalorder %s1084_s5, 0 }
  0x53   : > { %846 = dma.done.wait (%p1091_p3), [#allocation7], 2048  }
  0x54   : > { %848 = vsyncadd (%p1091_p3), [#allocation7], 4294965248  ;;  %v751_v1 = vld [vmem:[#allocation6 + $0x40] sm:$0xff]   ;;  %v753_v3 = vld [vmem:[#allocation6 + $0x48] sm:$0xff]   ;;  %s490_s5 = sld [smem:[#allocation2]]  ;;  %s628_s11 = sshll.u32 %s616_s0, 2 }
  0x55   : > { %v752_v2 = vld [vmem:[#allocation6] sm:$0xff]   ;;  %653 = vmatprep.subr.bf16.mxu0 %v751_v1  ;;  %681 = vmatprep.subr.bf16.mxu1 %v751_v1  ;;  %v754_v4 = vld [vmem:[#allocation6 + $0x8] sm:$0xff]   ;;  %v755_v5 = vld [vmem:[#allocation6 + $0x50] sm:$0xff]   ;;  %p288_p7 = scmp.lt.s32.totalorder %s628_s11, 7  ;;  %vm534_vm4 = vcmask 7168  }
  0x56   : > { %654 = vmatpush3.bf16.msra.mxu0 %v752_v2  ;;  %689 = vmatpush3.bf16.msra.mxu1 %v752_v2  ;;  %v756_v6 = vld [vmem:[#allocation6 + $0x10] sm:$0xff]   ;;  %v757_v7 = vld [vmem:[#allocation6 + $0x58] sm:$0xff]   ;;  %v759_v9 = vld [vmem:[#allocation6 + $0x60] sm:$0xff]  }
  0x57   : > { %655 = vmatprep.subr.bf16.mxu0 %v753_v3  ;;  %682 = vmatprep.subr.bf16.mxu1 %v753_v3  ;;  %v758_v8 = vld [vmem:[#allocation6 + $0x18] sm:$0xff]   ;;  %v760_v10 = vld [vmem:[#allocation6 + $0x20] sm:$0xff]   ;;  %v761_v11 = vld [vmem:[#allocation6 + $0x68] sm:$0xff]   ;;  %s1098_s11 = smov (!%p288_p7, %s628_s11), 7 }
  0x58   : > { %v295_v12 = vld [vmem:[%s1031_s20 + $0x8] sm:$0xff]  ;;  %v297_v13 = vld [vmem:[%s1031_s20 + $0x18] sm:$0xff]  ;;  %v763_v19 = vld [vmem:[#allocation6 + $0x70] sm:$0xff]   ;;  %s629_s12 = sshll.u32 %s1098_s11, 3 }
  0x59   : > { %v299_v14 = vld [vmem:[%s1031_s20 + $0x28] sm:$0xff]  ;;  %v303_v15 = vpack.c.bf16 %v297_v13, %v295_v12  ;;  %v301_v16 = vld [vmem:[%s1031_s20 + $0x38] sm:$0xff]  ;;  %v764_v20 = vld [vmem:[#allocation6 + $0x30] sm:$0xff]   ;;  %s291_s23 = scalar_lea.vmem %s1079_s6, %s629_s12 }
  0x5a   : > { %656 = vmatpush3.bf16.msra.mxu0 %v754_v4  ;;  %690 = vmatpush3.bf16.msra.mxu1 %v754_v4  ;;  %v305_v17 = vpack.c.bf16 %v301_v16, %v299_v14  ;;  %v762_v18 = vld [vmem:[#allocation6 + $0x28] sm:$0xff]   ;;  %v765_v21 = vld [vmem:[#allocation6 + $0x78] sm:$0xff]   ;;  %v294_v23 = vld [vmem:[%s1031_s20] sm:$0xff]  ;;  %v495_v40 = vstv %s490_s5 }
  0x5b   : > { %657 = vmatprep.subr.bf16.mxu0 %v755_v5  ;;  %683 = vmatprep.subr.bf16.mxu1 %v755_v5  ;;  %v766_v22 = vld [vmem:[#allocation6 + $0x38] sm:$0xff]   ;;  %v296_v24 = vld [vmem:[%s1031_s20 + $0x10] sm:$0xff]  ;;  %v298_v25 = vld [vmem:[%s1031_s20 + $0x20] sm:$0xff] }
  0x5c   : > { %473 = vmatprep.mubr.bf16.mxu0 %v303_v15  ;;  %481 = vmatprep.mubr.bf16.mxu1 %v305_v17  ;;  %v300_v26 = vld [vmem:[%s1031_s20 + $0x30] sm:$0xff]  ;;  %v302_v27 = vpack.c.bf16 %v296_v24, %v294_v23  ;;  %v630_v31 = vld [vmem:[%s1076_s3] ss:$0 sm:$0xff] }
  0x5d   : > { %v304_v28 = vpack.c.bf16 %v300_v26, %v298_v25  ;;  %v647_v48 = vld [vmem:[%s1077_s4] ss:$0 sm:$0xff] }
  0x5e   : > { %658 = vmatpush3.bf16.msra.mxu0 %v756_v6  ;;  %691 = vmatpush3.bf16.msra.mxu1 %v756_v6  ;;  %v648_v60 = vld [vmem:[#allocation3] ss:$0 sm:$0xff] }
  0x5f   : > { %659 = vmatprep.subr.bf16.mxu0 %v757_v7  ;;  %684 = vmatprep.subr.bf16.mxu1 %v757_v7 }
  0x62   : > { %660 = vmatpush3.bf16.msra.mxu0 %v758_v8  ;;  %692 = vmatpush3.bf16.msra.mxu1 %v758_v8 }
  0x63   : > { %661 = vmatprep.subr.bf16.mxu0 %v759_v9  ;;  %685 = vmatprep.subr.bf16.mxu1 %v759_v9 }
  0x66   : > { %662 = vmatpush3.bf16.msra.mxu0 %v760_v10  ;;  %693 = vmatpush3.bf16.msra.mxu1 %v760_v10 }
  0x67   : > { %663 = vmatprep.subr.bf16.mxu0 %v761_v11  ;;  %686 = vmatprep.subr.bf16.mxu1 %v761_v11 }
  0x6a   : > { %664 = vmatpush3.bf16.msra.mxu0 %v762_v18  ;;  %694 = vmatpush3.bf16.msra.mxu1 %v762_v18 }
  0x6b   : > { %665 = vmatprep.subr.bf16.mxu0 %v763_v19  ;;  %687 = vmatprep.subr.bf16.mxu1 %v763_v19 }
  0x6e   : > { %666 = vmatpush3.bf16.msra.mxu0 %v764_v20  ;;  %695 = vmatpush3.bf16.msra.mxu1 %v764_v20 }
  0x6f   : > { %667 = vmatprep.subr.bf16.mxu0 %v765_v21  ;;  %688 = vmatprep.subr.bf16.mxu1 %v765_v21 }
  0x72   : > { %668 = vmatpush3.bf16.msra.mxu0 %v766_v22  ;;  %696 = vmatpush3.bf16.msra.mxu1 %v766_v22 }
  0x75   : > { %474 = vmatmul.mubr.bf16.vlgmr.msra.gmra.mrb[0].mxu0 %v302_v27  ;;  %482 = vmatmul.mubr.bf16.vlgmr.msra.gmra.mrb[0].mxu1 %v304_v28 }
 0x148   : > { %v669_v29 = vpop.f32.mrb[0].mxu0  ;;  %v675_v30 = vpop.f32.mrb[0].mxu1 }
 0x149   : > { %v670_v32 = vpop.f32.mrb[1].mxu0  ;;  %v676_v33 = vpop.f32.mrb[1].mxu1 }
 0x14a   : > { %v671_v34 = vadd.f32 %v670_v32, %v669_v29  ;;  %v677_v35 = vadd.f32 %v676_v33, %v675_v30  ;;  %v672_v36 = vpop.f32.mrb[2].mxu0  ;;  %v678_v37 = vpop.f32.mrb[2].mxu1 }
 0x14b   : > { %v673_v38 = vpop.f32.mrb[3].mxu0  ;;  %v679_v39 = vpop.f32.mrb[3].mxu1 }
 0x14c   : > { %v476_v41 = vadd.f32 %v671_v34, %v630_v31  ;;  %v484_v42 = vadd.f32 %v677_v35, %v630_v31  ;;  %v674_v43 = vadd.f32 %v673_v38, %v672_v36  ;;  %v680_v44 = vadd.f32 %v679_v39, %v678_v37 }
 0x14e   : > { %v479_v45 = vadd.f32 %v674_v43, %v630_v31  ;;  %v487_v46 = vadd.f32 %v680_v44, %v630_v31  ;;  %vm493_vm0 = vcmp.ge.f32.partialorder %v484_v42, 0.0  ;;  %v498_v47 = vmul.f32 %v495_v40, %v484_v42 }
 0x14f   : > { %vm491_vm1 = vcmp.ge.f32.partialorder %v476_v41, 0.0  ;;  %v496_v49 = vmul.f32 %v495_v40, %v476_v41 }
 0x150   : > { %v502_v50 = vsel %vm493_vm0, %v484_v42, %v498_v47  ;;  %vm494_vm2 = vcmp.ge.f32.partialorder %v487_v46, 0.0  ;;  %v499_v51 = vmul.f32 %v495_v40, %v487_v46  ;;  %vm492_vm3 = vcmp.ge.f32.partialorder %v479_v45, 0.0 }
 0x151   : > { %v513_v52 = vmul.f32 %v647_v48, %v502_v50  ;;  %v500_v53 = vsel %vm491_vm1, %v476_v41, %v496_v49  ;;  %v497_v54 = vmul.f32 %v495_v40, %v479_v45 }
 0x152   : > { %v511_v55 = vmul.f32 %v647_v48, %v500_v53  ;;  %v503_v56 = vsel %vm494_vm2, %v487_v46, %v499_v51 }
 0x153   : > { %519 = vadd.xlane.f32.xlu1 %v513_v52  ;;  %v501_v57 = vsel %vm492_vm3, %v479_v45, %v497_v54  ;;  %v514_v58 = vmul.f32 %v647_v48, %v503_v56 }
 0x154   : > { %515 = vadd.xlane.f32.xlu0 %v511_v55  ;;  %v512_v59 = vmul.f32 %v647_v48, %v501_v57 }
 0x157   : > { %521 = vadd.xlane.f32.xlu1 %v514_v58 }
 0x158   : > { %517 = vadd.xlane.f32.xlu0 %v512_v59 }
 0x1e0   : > { %v520_v61 = vpop.xlane.xlu1 %519 }
 0x1e1   : > { %v516_v62 = vpop.xlane.xlu0 %515  ;;  %v532_v3 = vadd.f32 %v648_v60, %v520_v61 }
 0x1e2   : > { %v530_v63 = vadd.f32 %v648_v60, %v516_v62 }
 0x1e3   : > { %537 = vst.msk [vmem:[%s291_s23 + $0x10] sm:$0xff] %vm534_vm4, %v532_v3 }
 0x1e4   : > { %535 = vst.msk [vmem:[%s291_s23] sm:$0xff] %vm534_vm4, %v530_v63  ;;  %v522_v0 = vpop.xlane.xlu1 %521 }
 0x1e5   : > { %v518_v1 = vpop.xlane.xlu0 %517  ;;  %v533_v4 = vadd.f32 %v648_v60, %v522_v0 }
 0x1e6   : > { %v531_v2 = vadd.f32 %v648_v60, %v518_v1 }
 0x1e7   : > { %538 = vst.msk [vmem:[%s291_s23 + $0x18] sm:$0xff] %vm534_vm4, %v533_v4 }
 0x1e8   : > { %536 = vst.msk [vmem:[%s291_s23 + $0x8] sm:$0xff] %vm534_vm4, %v531_v2 }
 0x1e9 PF: > { %s1092_s28 = smov %s985_s25  ;;  %p20_p6 = scmp.ge.s32.totalorder %s959_s10, 4  }
 0x1ea   : > { %s1093_s25 = smov %s855_s26  ;;  %s1094_s26 = smov %s859_s27 }
 0x1eb   : > { %s1095_s27 = smov %s1092_s28  ;;  %s1096_s28 = smov %s959_s10 }
 0x1ec   :  { %22 = sbr.rel (!%p20_p6) target bundleno = 7 (0x7), region = 88 }
 0x1f3   :  { %561 = vsyncpa [#allocation5], 1 }
 0x1f4   :  { %563 = vsyncpa [#allocation5 + $0x1], 1 }
 0x1f5   :  { %564 = vsyncpa [#allocation7], 1 }

</bundles_post_ra>
